<compile_context>
chip_gen: v5e
topology: v5e:2x2
jax: 0.10.0
libtpu: 0.0.40
codegen_flags: <defaults>
</compile_context>

<pallas_src>
import functools
import math

import jax
import jax.numpy as jnp
from jax import lax
from jax.experimental import pallas as pl
from jax.experimental.pallas import tpu as pltpu


def _default_vmem_limit():
    # 128 MiB physical on v5e/v6e, 64 MiB per-core on v7x; take half, clamp.
    try:
        info = pltpu.get_tpu_info()
        cap = int(getattr(info, "vmem_capacity_bytes", 0) or 0)
    except Exception:
        cap = 0
    if cap <= 0:
        cap = 64 * 1024 * 1024
    return max(32 * 1024 * 1024, min(cap // 2, 100 * 1024 * 1024))


_VMEM_LIMIT = _default_vmem_limit()


def _cparams(*sems):
    return pltpu.CompilerParams(dimension_semantics=tuple(sems),
                                vmem_limit_bytes=_VMEM_LIMIT)


def _pick_tile(dim, candidates):
    for c in candidates:
        if dim % c == 0:
            return c
    return dim


def _round_up(x, m):
    return (x + m - 1) // m * m


# --------------------------------------------------------------------------
# Tiled matmul + bias (+ residual add, + sigmoid)
#   used for Linear layers and all 1x1 convs (fused q/k/v, proj, shortcut)
# --------------------------------------------------------------------------

def _matmul_k1_kernel(x_ref, w_ref, b_ref, *rest, act_out, has_add):
    # K fits one tile: no fp32 scratch accumulator, straight epilogue.
    if has_add:
        add_ref, o_ref = rest
    else:
        add_ref = None
        (o_ref,) = rest
    y = jnp.dot(x_ref[...], w_ref[...],
                preferred_element_type=jnp.float32) + b_ref[...]
    if has_add:
        y = y + add_ref[...].astype(jnp.float32)
    if act_out:                         # Swish() == sigmoid in this module
        y = pl.reciprocal(1.0 + jnp.exp(-y), approx=True)
    o_ref[...] = y.astype(o_ref.dtype)


def _matmul_kernel(x_ref, w_ref, b_ref, *rest, act_out, has_add):
    if has_add:
        add_ref, o_ref, acc_ref = rest
    else:
        add_ref = None
        o_ref, acc_ref = rest

    k = pl.program_id(2)

    @pl.when(k == 0)
    def _():
        acc_ref[...] = jnp.zeros_like(acc_ref)

    acc_ref[...] += jnp.dot(x_ref[...], w_ref[...],
                            preferred_element_type=jnp.float32)

    @pl.when(k == pl.num_programs(2) - 1)
    def _():
        y = acc_ref[...] + b_ref[...]
        if has_add:
            y = y + add_ref[...].astype(jnp.float32)
        if act_out:
            y = pl.reciprocal(1.0 + jnp.exp(-y), approx=True)
        o_ref[...] = y.astype(o_ref.dtype)


def matmul_bias(x, w, b, add=None, act_out=False, out_dtype=jnp.float32):
    """(M,K)@(K,N) + b [+ add] [-> sigmoid].  bf16 MXU inputs, fp32 accumulation."""
    M, K = x.shape
    N = w.shape[1]
    x = x.astype(jnp.bfloat16)
    w = w.astype(jnp.bfloat16)
    b2 = b.astype(jnp.float32).reshape(1, N)

    tn = _pick_tile(N, (256, 128))
    tk = _pick_tile(K, (512, 256, 128))
    m8 = _round_up(M, 8)
    tm = 256 if m8 >= 256 else m8
    Mp = _round_up(M, tm)
    if Mp != M:
        x = jnp.pad(x, ((0, Mp - M), (0, 0)))
        if add is not None:
            add = jnp.pad(add, ((0, Mp - M), (0, 0)))
    gm, gn, gk = Mp // tm, N // tn, K // tk

    has_add = add is not None
    if has_add:
        add = add.astype(jnp.bfloat16)     # residual DMA'd in bf16

    if gk == 1:
        in_specs = [
            pl.BlockSpec((tm, tk), lambda i, j: (i, 0)),
            pl.BlockSpec((tk, tn), lambda i, j: (0, j)),
            pl.BlockSpec((1, tn), lambda i, j: (0, j)),
        ]
        inputs = [x, w, b2]
        if has_add:
            in_specs.append(pl.BlockSpec((tm, tn), lambda i, j: (i, j)))
            inputs.append(add)
        kern = functools.partial(_matmul_k1_kernel, act_out=act_out, has_add=has_add)
        out = pl.pallas_call(
            kern,
            out_shape=jax.ShapeDtypeStruct((Mp, N), out_dtype),
            grid=(gm, gn),
            in_specs=in_specs,
            out_specs=pl.BlockSpec((tm, tn), lambda i, j: (i, j)),
            compiler_params=_cparams("parallel", "parallel"),
        )(*inputs)
    else:
        in_specs = [
            pl.BlockSpec((tm, tk), lambda i, j, k: (i, k)),
            pl.BlockSpec((tk, tn), lambda i, j, k: (k, j)),
            pl.BlockSpec((1, tn), lambda i, j, k: (0, j)),
        ]
        inputs = [x, w, b2]
        if has_add:
            in_specs.append(pl.BlockSpec((tm, tn), lambda i, j, k: (i, j)))
            inputs.append(add)
        kern = functools.partial(_matmul_kernel, act_out=act_out, has_add=has_add)
        out = pl.pallas_call(
            kern,
            out_shape=jax.ShapeDtypeStruct((Mp, N), out_dtype),
            grid=(gm, gn, gk),
            in_specs=in_specs,
            out_specs=pl.BlockSpec((tm, tn), lambda i, j, k: (i, j)),
            scratch_shapes=[pltpu.VMEM((tm, tn), jnp.float32)],
            compiler_params=_cparams("parallel", "parallel", "arbitrary"),
        )(*inputs)
    return out[:M] if Mp != M else out


def conv1x1(x_nhwc, w, b, add=None, out_dtype=jnp.bfloat16):
    B, H, W, C = x_nhwc.shape
    add2 = None if add is None else add.reshape(B * H * W, -1)
    out = matmul_bias(x_nhwc.reshape(B * H * W, C), w, b, add=add2,
                      out_dtype=out_dtype)
    return out.reshape(B, H, W, w.shape[1])


# --------------------------------------------------------------------------
# Fused 3x3 conv (stride 1, pad 1): nine in-VMEM tap matmuls, in-kernel iota
# edge masks, fused bias / broadcast time-embedding / residual add.
# --------------------------------------------------------------------------
# TODO(synk): for v7x's 64 MiB VMEM at large DDPM resolutions, add a row-block
# grid axis here (and channel blocks in group_norm); whole-image per-batch
# blocks are fine at these sizes.

def _conv3x3_kernel(x_ref, w_ref, b_ref, *rest, H, W, has_temb, has_add):
    refs = list(rest)
    temb_ref = refs.pop(0) if has_temb else None
    add_ref = refs.pop(0) if has_add else None
    o_ref = refs[0]

    HW = H * W
    tn = o_ref.shape[-1]
    col = lax.broadcasted_iota(jnp.int32, (HW, 1), 0) % W
    keep_l = col != 0            # 0 on output column 0      (left edge wrap)
    keep_r = col != (W - 1)      # 0 on output column W-1    (right edge wrap)

    acc_m = jnp.zeros((HW, tn), jnp.float32)   # dj == 1 taps (no mask)
    acc_l = jnp.zeros((HW, tn), jnp.float32)   # dj == 0 taps (left mask once)
    acc_r = jnp.zeros((HW, tn), jnp.float32)   # dj == 2 taps (right mask once)
    # x_ref holds the height-padded, row-flattened image with one guard element
    # on each end; tap (di, dj) is the contiguous window starting at di*W + dj.
    for di in range(3):
        for dj in range(3):
            start = di * W + dj                         # static offset
            patch = x_ref[0, pl.ds(start, HW), :]       # (HW, Cin) bf16
            contrib = jnp.dot(patch, w_ref[di * 3 + dj],
                              preferred_element_type=jnp.float32)
            if dj == 0:
                acc_l = acc_l + contrib
            elif dj == 2:
                acc_r = acc_r + contrib
            else:
                acc_m = acc_m + contrib

    y = (acc_m + jnp.where(keep_l, acc_l, 0.0) + jnp.where(keep_r, acc_r, 0.0)
         + b_ref[...])
    if has_temb:
        y = y + temb_ref[...]              # broadcast (1, tn) time-embedding row
    if has_add:
        y = y + add_ref[0].astype(jnp.float32)   # fused residual / shortcut
    o_ref[0] = y.astype(o_ref.dtype)


def conv3x3(x_nhwc, w9, b, temb=None, add=None, out_dtype=jnp.bfloat16):
    """3x3 conv, stride 1, padding 1.  w9: (9, Cin, Cout), taps ordered (kh, kw)."""
    B, H, W, C = x_nhwc.shape
    Cout = w9.shape[-1]
    x = x_nhwc.astype(jnp.bfloat16)
    w9 = w9.astype(jnp.bfloat16)

    # keep the contraction dim 16-aligned for the bf16 MXU feed (head conv: Cin=3)
    if C % 16:
        pad_c = 16 - C % 16
        x = jnp.pad(x, ((0, 0), (0, 0), (0, 0), (0, pad_c)))
        w9 = jnp.pad(w9, ((0, 0), (0, pad_c), (0, 0)))
        C = C + pad_c

    xp = jnp.pad(x, ((0, 0), (1, 1), (0, 0), (0, 0)))       # pad height only
    xf = xp.reshape(B, (H + 2) * W, C)
    xf = jnp.pad(xf, ((0, 0), (1, 1), (0, 0)))              # corner guard elements
    HW = H * W
    R = (H + 2) * W + 2

    tn = _pick_tile(Cout, (256, 128))
    gn = Cout // tn
    b2 = b.astype(jnp.float32).reshape(1, Cout)

    in_specs = [
        pl.BlockSpec((1, R, C), lambda bb, j: (bb, 0, 0)),
        pl.BlockSpec((9, C, tn), lambda bb, j: (0, 0, j)),
        pl.BlockSpec((1, tn), lambda bb, j: (0, j)),
    ]
    inputs = [xf, w9, b2]
    if temb is not None:
        in_specs.append(pl.BlockSpec((1, tn), lambda bb, j: (bb, j)))
        inputs.append(temb.astype(jnp.float32))
    if add is not None:
        in_specs.append(pl.BlockSpec((1, HW, tn), lambda bb, j: (bb, 0, j)))
        inputs.append(add.reshape(B, HW, Cout).astype(jnp.bfloat16))

    kern = functools.partial(_conv3x3_kernel, H=H, W=W,
                             has_temb=temb is not None, has_add=add is not None)
    out = pl.pallas_call(
        kern,
        out_shape=jax.ShapeDtypeStruct((B, HW, Cout), out_dtype),
        grid=(B, gn),
        in_specs=in_specs,
        out_specs=pl.BlockSpec((1, HW, tn), lambda bb, j: (bb, 0, j)),
        compiler_params=_cparams("parallel", "parallel"),
    )(*inputs)
    return out.reshape(B, H, W, Cout)


# --------------------------------------------------------------------------
# Fused 3x3 conv, stride 2, pad 1 (DownSample): 4-phase input decomposition,
# nine tap matmuls over only HW/4 output pixels.  No wasted stride-1 compute.
# --------------------------------------------------------------------------

def _conv3x3_s2_kernel(x_ref, w_ref, b_ref, o_ref, *, H2, W2, R2):
    HW4 = H2 * W2
    tn = o_ref.shape[-1]
    col = lax.broadcasted_iota(jnp.int32, (HW4, 1), 0) % W2
    keep_l = col != 0                     # mask wrap-around of the dj==0 taps

    acc_m = jnp.zeros((HW4, tn), jnp.float32)
    acc_l = jnp.zeros((HW4, tn), jnp.float32)
    # output (oh, ow) reads x[2*oh+di-1, 2*ow+dj-1]; each tap lives in one of the
    # four (row-parity, col-parity) phase tensors with shift in {-1, 0} only.
    for di in range(3):
        pr = 0 if di == 1 else 1          # source row parity
        sr = -1 if di == 0 else 0         # shift within the phase tensor
        for dj in range(3):
            pc = 0 if dj == 1 else 1
            sc = -1 if dj == 0 else 0
            ph = pr * 2 + pc
            start = ph * R2 + (sr + 1) * W2 + sc + 1      # static offset
            patch = x_ref[0, pl.ds(start, HW4), :]        # (HW4, Cin) bf16
            contrib = jnp.dot(patch, w_ref[di * 3 + dj],
                              preferred_element_type=jnp.float32)
            if dj == 0:
                acc_l = acc_l + contrib
            else:
                acc_m = acc_m + contrib

    y = acc_m + jnp.where(keep_l, acc_l, 0.0) + b_ref[...]
    o_ref[0] = y.astype(o_ref.dtype)


def conv3x3_down(x_nhwc, w9, b, out_dtype=jnp.bfloat16):
    """3x3 conv, stride 2, padding 1 (DownSample)."""
    B, H, W, C = x_nhwc.shape
    assert H % 2 == 0 and W % 2 == 0
    H2, W2 = H // 2, W // 2
    Cout = w9.shape[-1]
    x = x_nhwc.astype(jnp.bfloat16)
    w9 = w9.astype(jnp.bfloat16)
    if C % 16:
        pad_c = 16 - C % 16
        x = jnp.pad(x, ((0, 0), (0, 0), (0, 0), (0, pad_c)))
        w9 = jnp.pad(w9, ((0, 0), (0, pad_c), (0, 0)))
        C = C + pad_c

    # phase (pr, pc) tensor = x[:, pr::2, pc::2, :]
    xp = x.reshape(B, H2, 2, W2, 2, C).transpose(0, 2, 4, 1, 3, 5)   # (B,2,2,H2,W2,C)
    xp = jnp.pad(xp, ((0, 0), (0, 0), (0, 0), (1, 0), (0, 0), (0, 0)))  # top zero row
    xp = xp.reshape(B, 4, (H2 + 1) * W2, C)
    xp = jnp.pad(xp, ((0, 0), (0, 0), (1, 0), (0, 0)))                  # guard element
    R2 = (H2 + 1) * W2 + 1
    xf = xp.reshape(B, 4 * R2, C)

    HW4 = H2 * W2
    tn = _pick_tile(Cout, (256, 128))
    gn = Cout // tn
    b2 = b.astype(jnp.float32).reshape(1, Cout)

    kern = functools.partial(_conv3x3_s2_kernel, H2=H2, W2=W2, R2=R2)
    out = pl.pallas_call(
        kern,
        out_shape=jax.ShapeDtypeStruct((B, HW4, Cout), out_dtype),
        grid=(B, gn),
        in_specs=[pl.BlockSpec((1, 4 * R2, C), lambda bb, j: (bb, 0, 0)),
                  pl.BlockSpec((9, C, tn), lambda bb, j: (0, 0, j)),
                  pl.BlockSpec((1, tn), lambda bb, j: (0, j))],
        out_specs=pl.BlockSpec((1, HW4, tn), lambda bb, j: (bb, 0, j)),
        compiler_params=_cparams("parallel", "parallel"),
    )(xf, w9, b2)
    return out.reshape(B, H2, W2, Cout)


# --------------------------------------------------------------------------
# GroupNorm (+ optional Swish==sigmoid): bf16 input, fp32 statistics in-kernel
# --------------------------------------------------------------------------

def _group_norm_kernel(x_ref, gmap_ref, gmapT_ref, gamma_ref, beta_ref, o_ref,
                       *, n_per_group, eps, apply_sigmoid):
    x = x_ref[0].astype(jnp.float32)                                   # (HW, C)
    s1 = jnp.sum(x, axis=0, keepdims=True)                             # (1, C)
    gsum = jnp.dot(s1, gmap_ref[...], preferred_element_type=jnp.float32)   # (1, G)
    mean_c = jnp.dot(gsum / n_per_group, gmapT_ref[...],
                     preferred_element_type=jnp.float32)               # (1, C)
    d = x - mean_c
    s2 = jnp.sum(d * d, axis=0, keepdims=True)                         # (1, C)
    gvar = jnp.dot(s2, gmap_ref[...],
                   preferred_element_type=jnp.float32) / n_per_group   # (1, G)
    var_c = jnp.dot(gvar, gmapT_ref[...], preferred_element_type=jnp.float32)
    y = d * lax.rsqrt(var_c + eps) * gamma_ref[...] + beta_ref[...]
    if apply_sigmoid:
        y = pl.reciprocal(1.0 + jnp.exp(-y), approx=True)
    o_ref[0] = y.astype(o_ref.dtype)


def group_norm(x_nhwc, gamma, beta, num_groups=32, eps=1e-5,
               apply_sigmoid=False, out_dtype=jnp.bfloat16):
    B, H, W, C = x_nhwc.shape
    assert C % num_groups == 0
    cg = C // num_groups
    HW = H * W
    x2 = x_nhwc.reshape(B, HW, C)                       # keep bf16; upcast in-kernel
    gmap = jax.nn.one_hot(jnp.arange(C) // cg, num_groups, dtype=jnp.float32)  # (C, G)
    gmapT = gmap.T
    kern = functools.partial(_group_norm_kernel, n_per_group=float(HW * cg),
                             eps=eps, apply_sigmoid=apply_sigmoid)
    out = pl.pallas_call(
        kern,
        out_shape=jax.ShapeDtypeStruct((B, HW, C), out_dtype),
        grid=(B,),
        in_specs=[pl.BlockSpec((1, HW, C), lambda b: (b, 0, 0)),
                  pl.BlockSpec((C, num_groups), lambda b: (0, 0)),
                  pl.BlockSpec((num_groups, C), lambda b: (0, 0)),
                  pl.BlockSpec((1, C), lambda b: (0, 0)),
                  pl.BlockSpec((1, C), lambda b: (0, 0))],
        out_specs=pl.BlockSpec((1, HW, C), lambda b: (b, 0, 0)),
        compiler_params=_cparams("parallel"),
    )(x2, gmap, gmapT, gamma.reshape(1, C), beta.reshape(1, C))
    return out.reshape(B, H, W, C)


# --------------------------------------------------------------------------
# Flash-style attention (online softmax, tiled over batch / query / KV blocks).
# The C^-0.5 score scale is pre-folded into the q projection weights.
# --------------------------------------------------------------------------

def _flash_attn_kernel(q_ref, k_ref, v_ref, o_ref, m_sc, l_sc, acc_sc):
    kv = pl.program_id(2)

    @pl.when(kv == 0)
    def _():
        m_sc[...] = jnp.full_like(m_sc, -jnp.inf)
        l_sc[...] = jnp.zeros_like(l_sc)
        acc_sc[...] = jnp.zeros_like(acc_sc)

    s = jnp.einsum("bqd,bkd->bqk", q_ref[...], k_ref[...],
                   preferred_element_type=jnp.float32)
    m_new = jnp.maximum(m_sc[...], s.max(-1, keepdims=True))
    alpha = jnp.exp(m_sc[...] - m_new)
    p = jnp.exp(s - m_new)
    l_sc[...] = alpha * l_sc[...] + p.sum(-1, keepdims=True)
    acc_sc[...] = alpha * acc_sc[...] + jnp.einsum(
        "bqk,bkd->bqd", p.astype(v_ref.dtype), v_ref[...],
        preferred_element_type=jnp.float32)
    m_sc[...] = m_new

    @pl.when(kv == pl.num_programs(2) - 1)
    def _():
        o_ref[...] = (acc_sc[...] * pl.reciprocal(l_sc[...], approx=True)
                      ).astype(o_ref.dtype)


def attention(q, k, v, out_dtype=jnp.bfloat16):
    """softmax(q k^T) v over (B, HW, C); scale already folded into q."""
    B, HW, C = q.shape
    tq = 128 if HW % 128 == 0 else HW
    tkv = 128 if HW % 128 == 0 else HW
    q = q.astype(jnp.bfloat16)
    k = k.astype(jnp.bfloat16)
    v = v.astype(jnp.bfloat16)
    return pl.pallas_call(
        _flash_attn_kernel,
        out_shape=jax.ShapeDtypeStruct((B, HW, C), out_dtype),
        grid=(B, HW // tq, HW // tkv),
        in_specs=[pl.BlockSpec((1, tq, C), lambda b, qi, ki: (b, qi, 0)),
                  pl.BlockSpec((1, tkv, C), lambda b, qi, ki: (b, ki, 0)),
                  pl.BlockSpec((1, tkv, C), lambda b, qi, ki: (b, ki, 0))],
        out_specs=pl.BlockSpec((1, tq, C), lambda b, qi, ki: (b, qi, 0)),
        scratch_shapes=[pltpu.VMEM((1, tq, 1), jnp.float32),
                        pltpu.VMEM((1, tq, 1), jnp.float32),
                        pltpu.VMEM((1, tq, C), jnp.float32)],
        compiler_params=_cparams("parallel", "parallel", "arbitrary"),
    )(q, k, v)


# --------------------------------------------------------------------------
# Deterministic synthetic parameters (shapes match the PyTorch module)
# --------------------------------------------------------------------------

def _xavier_uniform(key, shape, fan_in, fan_out, gain=1.0):
    bound = gain * math.sqrt(6.0 / (fan_in + fan_out))
    return jax.random.uniform(key, shape, jnp.float32, -bound, bound)


class _KeyGen:
    def __init__(self, key):
        self.key = key

    def __call__(self):
        self.key, k = jax.random.split(self.key)
        return k


def make_conv3(kg, cin, cout, gain=1.0):
    w = _xavier_uniform(kg(), (cout, cin, 3, 3), cin * 9, cout * 9, gain)
    # (Cout, Cin, kh, kw) -> (kh, kw, Cin, Cout) -> (9, Cin, Cout)
    w9 = jnp.transpose(w, (2, 3, 1, 0)).reshape(9, cin, cout).astype(jnp.bfloat16)
    return {"w": w9, "b": jnp.zeros((cout,), jnp.float32)}


def make_conv1(kg, cin, cout, gain=1.0):
    w = _xavier_uniform(kg(), (cout, cin, 1, 1), cin, cout, gain)
    w_mat = jnp.transpose(w, (2, 3, 1, 0)).reshape(cin, cout).astype(jnp.bfloat16)
    return {"w": w_mat, "b": jnp.zeros((cout,), jnp.float32)}


def make_linear(kg, din, dout):
    w = _xavier_uniform(kg(), (dout, din), din, dout)
    return {"w": w.T.astype(jnp.bfloat16), "b": jnp.zeros((dout,), jnp.float32)}


def make_gn(c):
    return {"gamma": jnp.ones((c,), jnp.float32), "beta": jnp.zeros((c,), jnp.float32)}


def make_resblock(kg, in_ch, out_ch, tdim, use_attn):
    p = {
        "gn1": make_gn(in_ch),
        "conv1": make_conv3(kg, in_ch, out_ch),
        "temb_proj": make_linear(kg, tdim, out_ch),
        "gn2": make_gn(out_ch),
        "conv2": make_conv3(kg, out_ch, out_ch),
        "attn": bool(use_attn),
    }
    if in_ch != out_ch:
        p["shortcut"] = make_conv1(kg, in_ch, out_ch)
    if use_attn:
        p["attn_gn"] = make_gn(out_ch)
        wq = make_conv1(kg, out_ch, out_ch)
        wk = make_conv1(kg, out_ch, out_ch)
        wv = make_conv1(kg, out_ch, out_ch)
        scale = float(out_ch) ** (-0.5)
        # fused q/k/v projection: one lane-dense (C, 3C) matmul; the attention
        # score scale C^-0.5 is folded into the q slice (zero runtime cost).
        p["proj_qkv"] = {"w": jnp.concatenate([wq["w"] * scale, wk["w"], wv["w"]],
                                              axis=1),
                         "b": jnp.concatenate([wq["b"] * scale, wk["b"], wv["b"]],
                                              axis=0)}
        p["proj"] = make_conv1(kg, out_ch, out_ch, gain=1e-5)
    return p


def init_unet_params(key, T, ch, ch_mult, attn, num_res_blocks):
    kg = _KeyGen(key)
    tdim = ch * 4
    params = {}

    # TimeEmbedding sinusoidal table, built exactly like the PyTorch code
    d_model = ch
    freqs = jnp.exp(-(jnp.arange(0, d_model, 2, dtype=jnp.float32) / d_model)
                    * math.log(10000.0))
    pos = jnp.arange(T, dtype=jnp.float32)
    emb = pos[:, None] * freqs[None, :]
    emb = jnp.stack([jnp.sin(emb), jnp.cos(emb)], axis=-1).reshape(T, d_model)
    params["time_table"] = emb
    params["time_lin1"] = make_linear(kg, d_model, tdim)
    params["time_lin2"] = make_linear(kg, tdim, tdim)

    params["head"] = make_conv3(kg, 3, ch)

    downblocks = []
    chs = [ch]
    now_ch = ch
    for i, mult in enumerate(ch_mult):
        out_ch = ch * mult
        for _ in range(num_res_blocks):
            downblocks.append(("res", make_resblock(kg, now_ch, out_ch, tdim, i in attn)))
            now_ch = out_ch
            chs.append(now_ch)
        if i != len(ch_mult) - 1:
            downblocks.append(("down", make_conv3(kg, now_ch, now_ch)))
            chs.append(now_ch)
    params["downblocks"] = downblocks

    params["middle"] = [make_resblock(kg, now_ch, now_ch, tdim, True),
                        make_resblock(kg, now_ch, now_ch, tdim, False)]

    upblocks = []
    for i, mult in reversed(list(enumerate(ch_mult))):
        out_ch = ch * mult
        for _ in range(num_res_blocks + 1):
            upblocks.append(("res", make_resblock(kg, chs.pop() + now_ch, out_ch, tdim,
                                                  i in attn)))
            now_ch = out_ch
        if i != 0:
            upblocks.append(("up", make_conv3(kg, now_ch, now_ch)))
    assert len(chs) == 0
    params["upblocks"] = upblocks

    params["tail_gn"] = make_gn(now_ch)
    params["tail_conv"] = make_conv3(kg, now_ch, 3, gain=1e-5)
    return params


# --------------------------------------------------------------------------
# Forward pass (mirrors UNet.forward)
# --------------------------------------------------------------------------

def time_embedding_forward(params, t):
    emb = params["time_table"][t]                                             # (B, d_model)
    h = matmul_bias(emb, params["time_lin1"]["w"], params["time_lin1"]["b"],
                    act_out=True)                                             # Linear -> Swish
    h = matmul_bias(h, params["time_lin2"]["w"], params["time_lin2"]["b"])    # Linear
    return h                                                                  # (B, tdim)


def attn_forward(p, x):
    B, H, W, C = x.shape
    HW = H * W
    h = group_norm(x, p["attn_gn"]["gamma"], p["attn_gn"]["beta"],
                   out_dtype=jnp.bfloat16)
    qkv = matmul_bias(h.reshape(B * HW, C), p["proj_qkv"]["w"], p["proj_qkv"]["b"],
                      out_dtype=jnp.bfloat16)                                 # fused q/k/v
    qkv = qkv.reshape(B, HW, 3 * C)
    q, k, v = qkv[..., :C], qkv[..., C:2 * C], qkv[..., 2 * C:]
    a = attention(q, k, v)                                                    # (B, HW, C)
    out = matmul_bias(a.reshape(B * HW, C), p["proj"]["w"], p["proj"]["b"],
                      add=x.reshape(B * HW, C), out_dtype=jnp.bfloat16)       # x + proj(h)
    return out.reshape(B, H, W, C)


def resblock_forward(p, x, temb_sig):
    h = group_norm(x, p["gn1"]["gamma"], p["gn1"]["beta"],
                   apply_sigmoid=True, out_dtype=jnp.bfloat16)
    t = matmul_bias(temb_sig, p["temb_proj"]["w"], p["temb_proj"]["b"])       # (B, out_ch)
    if "shortcut" in p:
        sc = conv1x1(x, p["shortcut"]["w"], p["shortcut"]["b"],
                     out_dtype=jnp.bfloat16)
    else:
        sc = x
    h = conv3x3(h, p["conv1"]["w"], p["conv1"]["b"], temb=t)                  # +temb fused
    h = group_norm(h, p["gn2"]["gamma"], p["gn2"]["beta"],
                   apply_sigmoid=True, out_dtype=jnp.bfloat16)
    # TODO(synk): nn.Dropout is identity at inference; training-mode dropout not modeled.
    h = conv3x3(h, p["conv2"]["w"], p["conv2"]["b"], add=sc)                  # +shortcut fused
    if p["attn"]:
        h = attn_forward(p, h)
    return h


def unet_forward(params, x_nchw, t):
    x = jnp.transpose(x_nchw, (0, 2, 3, 1))                  # NCHW -> NHWC
    temb = time_embedding_forward(params, t)                 # (B, tdim)
    temb_sig = jax.nn.sigmoid(temb)                          # shared Swish() of time_proj

    h = conv3x3(x, params["head"]["w"], params["head"]["b"])
    hs = [h]
    for kind, p in params["downblocks"]:
        if kind == "res":
            h = resblock_forward(p, h, temb_sig)
        else:
            h = conv3x3_down(h, p["w"], p["b"])              # true stride-2 conv kernel
        hs.append(h)

    for p in params["middle"]:
        h = resblock_forward(p, h, temb_sig)

    for kind, p in params["upblocks"]:
        if kind == "res":
            h = jnp.concatenate([h, hs.pop()], axis=-1)      # cat along channels (bf16)
            h = resblock_forward(p, h, temb_sig)
        else:
            # UpSample: nearest 2x + conv.
            # TODO(synk): fusing the nearest-neighbour repeat into conv3x3's input
            # indexing needs a sublane-strided store epilogue; left in XLA for now.
            h = jnp.repeat(jnp.repeat(h, 2, axis=1), 2, axis=2)
            h = conv3x3(h, p["w"], p["b"])
    assert len(hs) == 0

    h = group_norm(h, params["tail_gn"]["gamma"], params["tail_gn"]["beta"],
                   apply_sigmoid=True, out_dtype=jnp.bfloat16)
    h = conv3x3(h, params["tail_conv"]["w"], params["tail_conv"]["b"],
                out_dtype=jnp.float32)
    return jnp.transpose(h, (0, 3, 1, 2))                    # NHWC -> NCHW


# --------------------------------------------------------------------------

if __name__ == "__main__":
    # Small UNet config: T=8, ch=32 (GroupNorm(32,.) requires multiples of 32),
    # ch_mult=[1,2], attention at level 1, one res-block per level.
    T, ch, ch_mult, attn, num_res_blocks = 8, 32, [1, 2], [1], 1

    params = init_unet_params(jax.random.PRNGKey(42), T, ch, ch_mult, attn,
                              num_res_blocks)

    key = jax.random.PRNGKey(0)
    kx, kt = jax.random.split(key)
    x = jax.random.normal(kx, (2, 3, 16, 16), jnp.float32)   # NCHW, like PyTorch
    t = jax.random.randint(kt, (2,), 0, T)

    out = unet_forward(params, x, t)
    out = jax.block_until_ready(out)
    assert out.shape == (2, 3, 16, 16)
    assert bool(jnp.all(jnp.isfinite(out)))
    print("KERNEL_OK")
</pallas_src>

<mosaic_0001>
module attributes {stable_mosaic.version = 11 : i64} {
  func.func @_matmul_k1_kernel(%arg0: i32, %arg1: i32, %arg2: memref<8x32xbf16, #tpu.memory_space<vmem>>, %arg3: memref<32x128xbf16, #tpu.memory_space<vmem>>, %arg4: memref<1x128xf32, #tpu.memory_space<vmem>>, %arg5: memref<8x128xf32, #tpu.memory_space<vmem>>) attributes {dimension_semantics = [#tpu.dimension_semantics<parallel>, #tpu.dimension_semantics<parallel>], iteration_bounds = array<i64: 1, 1>, scalar_prefetch = 0 : i64, scratch_operands = 0 : i64, tpu.core_type = #tpu.core_type<tc>, window_params = [{transform_indices = @transform_0, window_bounds = array<i64: 8, 32>}, {transform_indices = @transform_1, window_bounds = array<i64: 32, 128>}, {transform_indices = @transform_2, window_bounds = array<i64: 1, 128>}, {transform_indices = @transform_3, window_bounds = array<i64: 8, 128>}]} {
    %c0 = arith.constant 0 : index
    %c0_0 = arith.constant 0 : index
    %0 = vector.load %arg2[%c0, %c0_0] : memref<8x32xbf16, #tpu.memory_space<vmem>>, vector<8x32xbf16>
    %c0_1 = arith.constant 0 : index
    %c0_2 = arith.constant 0 : index
    %1 = vector.load %arg3[%c0_1, %c0_2] : memref<32x128xbf16, #tpu.memory_space<vmem>>, vector<32x128xbf16>
    %cst = arith.constant dense<0.000000e+00> : vector<8x128xf32>
    %2 = tpu.matmul %0, %1, %cst {dimension_numbers = #tpu.dot_dimension_numbers<[1], [0], [0], [1], [0, 0, 1, 1], [], []>} : vector<8x32xbf16>, vector<32x128xbf16>, vector<8x128xf32> -> vector<8x128xf32>
    %c0_3 = arith.constant 0 : index
    %c0_4 = arith.constant 0 : index
    %3 = vector.load %arg4[%c0_3, %c0_4] : memref<1x128xf32, #tpu.memory_space<vmem>>, vector<1x128xf32>
    %4 = vector.broadcast %3 : vector<1x128xf32> to vector<8x128xf32>
    %5 = arith.addf %2, %4 : vector<8x128xf32>
    %cst_5 = arith.constant 0.000000e+00 : f32
    %6 = vector.broadcast %cst_5 : f32 to vector<8x128xf32>
    %7 = arith.subf %6, %5 : vector<8x128xf32>
    %8 = math.exp %7 : vector<8x128xf32>
    %cst_6 = arith.constant 1.000000e+00 : f32
    %9 = vector.broadcast %cst_6 : f32 to vector<8x128xf32>
    %10 = arith.addf %9, %8 : vector<8x128xf32>
    %11 = tpu.reciprocal %10 {approx = true} : vector<8x128xf32> -> vector<8x128xf32>
    %c0_7 = arith.constant 0 : index
    %c0_8 = arith.constant 0 : index
    %12 = vector.load %arg5[%c0_7, %c0_8] : memref<8x128xf32, #tpu.memory_space<vmem>>, vector<8x128xf32>
    tpu.vector_store %arg5[%c0_7, %c0_8], %11 {strides = array<i32>} : memref<8x128xf32, #tpu.memory_space<vmem>>, vector<8x128xf32>,
    return
  }
  func.func @transform_0(%arg0: i32, %arg1: i32) -> (i32, i32) {
    %c0_i32 = arith.constant 0 : i32
    %c0_i32_0 = arith.constant 0 : i32
    return %arg0, %c0_i32 : i32, i32
  }
  func.func @transform_1(%arg0: i32, %arg1: i32) -> (i32, i32) {
    %c0_i32 = arith.constant 0 : i32
    %c0_i32_0 = arith.constant 0 : i32
    return %c0_i32, %arg1 : i32, i32
  }
  func.func @transform_2(%arg0: i32, %arg1: i32) -> (i32, i32) {
    %c0_i32 = arith.constant 0 : i32
    %c0_i32_0 = arith.constant 0 : i32
    return %c0_i32, %arg1 : i32, i32
  }
  func.func @transform_3(%arg0: i32, %arg1: i32) -> (i32, i32) {
    %c0_i32 = arith.constant 0 : i32
    return %arg0, %arg1 : i32, i32
  }
}

</mosaic_0001>

<bundles_post_ra>
// kernel: tpu_custom_call.1
= control target key start
LH: loop header
LB: loop body
LE: loop exit
PB: predicated region body
PF: predicated region fallthrough
CT: control target
= control target key end

     0   :  { %8 = vsyncpa [#allocation3], 0  ;;  %s244_s0 = inlined_call_operand.hbm [shape: bf16[8,32], index: 0, kind: input, shape index: {}]   ;;  %s245_s1 = inlined_call_operand.hbm [shape: bf16[32,128], index: 1, kind: input, shape index: {}]   ;;  %s246_s2 = inlined_call_operand.vmem [shape: f32[1,128], index: 2, kind: input, shape index: {}]   ;;  %s247_s3 = inlined_call_operand.hbm [shape: f32[8,128], index: 3, kind: output, shape index: {}]  }
   0x1   :  { %9 = vsyncpa [#allocation6], 0 }
   0x2   :  { %10 = vsyncpa [#allocation4], 0  ;;  %s16_s14 = sshll.u32 %s244_s0, 4  ;;  %s207_s15 = smov [#allocation2]   ;;  %s17_s14 = int_to_ptr.hbm [resolvable:$true] %s16_s14 }
   0x3   :  { %s18_s16 = sshll.u32 %s207_s15, 4  ;;  %s26_s19 = sshll.u32 %s245_s1, 4  ;;  %s19_s16 = int_to_ptr.vmem [resolvable:$true] %s18_s16  ;;  %s27_s19 = int_to_ptr.hbm [resolvable:$true] %s26_s19 }
   0x4   :  { %21 = dma.hbm_to_vmem [thread:$0]  %s17_s14, 64, %s19_s16, [#allocation3]  }
   0x5   :  { %s208_s20 = smov [#allocation5]   ;;  %s209_s22 = smov 64  }
   0x6   :  { %s28_s21 = sshll.u32 %s208_s20, 4  ;;  %s210_s23 = smov 4   ;;  %s29_s21 = int_to_ptr.vmem [resolvable:$true] %s28_s21 }
   0x7   :  { %34 = dma.hbm_to_vmem [thread:$0]  %s27_s19, 256, %s29_s21, [#allocation6], %s209_s22, %s209_s22, %s210_s23  }
   0x8   :  { %201 = dma.done.wait [#allocation3], 64  }
   0x9   :  { %202 = vsyncadd [#allocation3], 4294967232 }
   0xa   :  { %203 = dma.done.wait [#allocation6], 256  }
   0xb   :  { %204 = vsyncadd [#allocation6], 4294967040  ;;  %v118_v0 = vld [vmem:[#allocation5 + $0x8] sm:$0xff]  ;;  %v117_v1 = vld [vmem:[#allocation5] sm:$0xff]  ;;  %vm67_vm0 = vcmask 261120   ;;  %s211_s24 = smov [#allocation7]  }
   0xc   :  { %77 = vmatpush.bf16.msra.mxu0 %v118_v0  ;;  %v46_v2 = vld [vmem:[#allocation2] sm:$0xf]  ;;  %s95_s25 = sshll.u32 %s211_s24, 4  ;;  %s97_s28 = sshll.u32 %s247_s3, 4  ;;  %s96_s25 = int_to_ptr.vmem [resolvable:$true] %s95_s25  ;;  %s98_s28 = int_to_ptr.hbm [resolvable:$true] %s97_s28 }
   0xd   :  { %v124_v3 = vld [vmem:[%s246_s2] ss:$0 sm:$0xff] }
  0x10   :  { %78 = vmatpush.bf16.msra.mxu0 %v117_v1 }
  0x13   :  { %116 = vmatmul.msk.bf16.vlgmr.msra.gmra.mxu0 %vm67_vm0, %v46_v2 }
  0x90   :  { %v80_v4 = vpop.f32.mrf.mxu0 }
  0x91   :  { %v81_v5 = vadd.f32 %v124_v3, %v80_v4 }
  0x93   :  { %v84_v6 = vsub.f32 0.0, %v81_v5 }
  0x95   :  { %v85_v7 = vmul.f32 1.442695, %v84_v6 }
  0x97   :  { %125 = vpow2.f32 %v85_v7 }
  0x98   :  { %v82_v8 = vpop.f32.mrf.mxu0 }
  0x9d   :  { %v126_v9 = vpop.eup %125 }
  0x9e   :  { %v87_v10 = vadd.f32 1.0, %v126_v9 }
  0xa0   :  { %127 = vrcp.f32 %v87_v10 }
  0xa6   :  { %v128_v11 = vpop.eup %127 }
  0xa7   :  { %89 = vst [vmem:[#allocation7] sm:$0xff] %v128_v11 }
  0xa8   :  { %100 = dma.vmem_to_hbm [thread:$0]  %s96_s25, 128, %s98_s28, [#allocation4]  }
  0xa9   :  { %205 = dma.done.wait [#allocation4], 128  }
  0xaa   :  { %206 = vsyncadd [#allocation4], 4294967168 }
  0xab   :  { %105 = vsyncpa [#allocation3], 1 }
  0xac   :  { %106 = vsyncpa [#allocation6], 1 }
  0xad   :  { %107 = vsyncpa [#allocation4], 1 }

</bundles_post_ra>
